<compile_context>
chip_gen: v5e
topology: v5e:2x2
jax: 0.10.0
libtpu: 0.0.40
codegen_flags: <defaults>
</compile_context>

<pallas_src>
import functools

import jax
import jax.numpy as jnp
import numpy as np
from jax.experimental import pallas as pl
from jax.experimental.pallas import tpu as pltpu


def _keep_masks(W, HbW):
    # Output-anchor lane -> column index within its row.  Multiplicative masks
    # that zero the horizontally out-of-range taps (kw=0 @ w==0, kw=2 @
    # w==W-1), which the dense-W flattening would otherwise alias to the
    # neighbouring row.
    col = jax.lax.broadcasted_iota(jnp.int32, (1, HbW), 1) % W
    keep_first = (col != 0).astype(jnp.float32)        # for kw == 0 taps
    keep_last = (col != (W - 1)).astype(jnp.float32)   # for kw == 2 taps
    return keep_first, keep_last


def _tap_slice(ref2d, kh, kw, *, W, HbW, keep_first, keep_last):
    # Shifted operand for conv tap (kh, kw): a static lane slice of the
    # flattened (Hb+4)-row input window (rows [hb*Hb, hb*Hb + Hb + 4) of the
    # 2-row-top-padded plane).
    o = (kh + 1) * W + (kw - 1)
    s = ref2d[:, o:o + HbW]
    if kw == 0:
        s = s * keep_first
    elif kw == 2:
        s = s * keep_last
    return s


def _mask_conv_kernel(mf_ref, wm_ref, o_ref, *, W, Hb, Cin, stack_taps):
    # mf_ref : (Cin, (Hb+4)*W)  flattened overlapped input window (VMEM)
    # wm_ref : (Cout, 9*Cin)    tap-major mask-conv weights
    # o_ref  : (Cout, Hb*W)     per-(image, H-tile) conv output block
    HbW = Hb * W
    keep_first, keep_last = _keep_masks(W, HbW)
    tap = functools.partial(_tap_slice, mf_ref, W=W, HbW=HbW,
                            keep_first=keep_first, keep_last=keep_last)
    if stack_taps:
        # Small Cin: one K = 9*Cin matmul (better MXU fill, single accumulate).
        xs = jnp.concatenate(
            [tap(kh, kw) for kh in range(3) for kw in range(3)], axis=0)
        o_ref[...] = jnp.dot(wm_ref[...], xs,
                             preferred_element_type=jnp.float32)
    else:
        # Large Cin: 9 matmuls accumulated straight into the VMEM output
        # block (no large live-value accumulator held across taps).
        for t in range(9):
            kh, kw = divmod(t, 3)
            part = jnp.dot(wm_ref[:, t * Cin:(t + 1) * Cin], tap(kh, kw),
                           preferred_element_type=jnp.float32)
            if t == 0:
                o_ref[...] = part
            else:
                o_ref[...] += part


def _att_add_relu_kernel(idx_ref, mconv_ref, att_ref, wa_ref, b_ref, o_ref,
                         *, W, Hb):
    # idx_ref  : (N,) int32 scalar prefetch (consumed by the mconv index_map)
    # mconv_ref: (Cout, Hb*W)   gathered per-image mask-conv tile
    # att_ref  : (1, (Hb+4)*W)  flattened attention window of instance n
    # wa_ref   : (Cout, 9)      att-conv weights (in-channels == 1)
    # b_ref    : (Cout, 1)      bias_mask + bias_att
    # o_ref    : (Cout, Hb*W)
    del idx_ref  # the per-image gather happens in the index_map
    HbW = Hb * W
    keep_first, keep_last = _keep_masks(W, HbW)
    taps = [_tap_slice(att_ref, kh, kw, W=W, HbW=HbW,
                       keep_first=keep_first, keep_last=keep_last)
            for kh in range(3) for kw in range(3)]
    a9 = jnp.concatenate(taps, axis=0)                       # (9, Hb*W)
    att_out = jnp.dot(wa_ref[...], a9, preferred_element_type=jnp.float32)
    o_ref[...] = jnp.maximum(mconv_ref[...] + att_out + b_ref[...], 0.0)


def _pick_hb(H, W, Cin, Cout, budget_bytes=24 << 20):
    """Largest H-tile (rows) that divides H, keeps the flat output block a
    multiple of 128 lanes, and fits the double-buffered kernel-1 blocks in a
    conservative VMEM budget.
    TODO(synk): make the budget chip-aware (v7x: 64 MiB VMEM vs 128 MiB)."""
    legal = [hb for hb in range(1, H + 1)
             if H % hb == 0 and (hb == H or (hb * W) % 128 == 0)]
    best = None
    for hb in legal:
        need = 4 * (2 * Cin * (hb + 4) * W + 2 * Cout * hb * W + 9 * Cin * Cout)
        if need <= budget_bytes:
            best = hb
    return best if best is not None else legal[0]


def mask_att_module(mask_feat, attention, ins_ind_count, params, *,
                    hb=None, stack_taps=None):
    """mask_feat: (B, Cin, H, W) NCHW; attention: (N, 1, H, W) NCHW.
    ins_ind_count: static python ints, sum == N, len == B.
    Returns (N, Cout, H, W), matching MaskAttModule.forward."""
    w_m, b_m, w_a, b_a = params  # (Cout,Cin,3,3),(Cout,),(Cout,1,3,3),(Cout,)
    B, Cin, H, W = mask_feat.shape
    N = attention.shape[0]
    Cout = w_m.shape[0]
    counts = [int(c) for c in ins_ind_count]  # must stay static python ints
    assert sum(counts) == N and len(counts) == B

    if N == 0:  # edge case: no instances
        return jnp.zeros((0, Cout, H, W), jnp.float32)

    if hb is None:
        hb = _pick_hb(H, W, Cin, Cout)
    assert H % hb == 0 and (hb == H or (hb * W) % 128 == 0), (hb, H, W)
    Hb, nH = hb, H // hb
    Ht = Hb + 4          # rows per input window: conv halo + slack row
    LT = Ht * W
    HbW = Hb * W
    if stack_taps is None:
        stack_taps = 9 * Cin * HbW * 4 <= (1 << 20)

    # 2 zero rows above and below, then overlapping (Hb+4)-row windows per
    # H-tile, flattened so (rows, W) live on the lane axis.  NCHW is already
    # channel-major, so there are no transposes anywhere.
    mf_p = jnp.pad(mask_feat, ((0, 0), (0, 0), (2, 2), (0, 0)))
    at_p = jnp.pad(attention, ((0, 0), (0, 0), (2, 2), (0, 0)))
    mf_tiles = jnp.stack(
        [mf_p[:, :, t * Hb:t * Hb + Ht, :] for t in range(nH)],
        axis=1).reshape(B, nH, Cin, LT)
    at_tiles = jnp.stack(
        [at_p[:, :, t * Hb:t * Hb + Ht, :] for t in range(nH)],
        axis=1).reshape(N, nH, 1, LT)

    # torch (Cout, Cin, kh, kw) -> (Cout, 9*Cin) with tap-major columns.
    wm_cat = jnp.transpose(w_m, (0, 2, 3, 1)).reshape(Cout, 9 * Cin)
    wa_cat = jnp.reshape(w_a, (Cout, 9))
    b_cat = (b_m + b_a).reshape(Cout, 1)       # both biases fused into one add

    # ---------- kernel 1: per-image mask conv (computed once per image) -----
    mconv = pl.pallas_call(
        functools.partial(_mask_conv_kernel, W=W, Hb=Hb, Cin=Cin,
                          stack_taps=stack_taps),
        out_shape=jax.ShapeDtypeStruct((B, Cout, H * W), jnp.float32),
        grid_spec=pltpu.PrefetchScalarGridSpec(
            num_scalar_prefetch=0,
            grid=(B, nH),
            in_specs=[
                pl.BlockSpec((None, None, Cin, LT), lambda b, t: (b, t, 0, 0)),
                pl.BlockSpec((Cout, 9 * Cin), lambda b, t: (0, 0)),
            ],
            out_specs=pl.BlockSpec((None, Cout, HbW), lambda b, t: (b, 0, t)),
        ),
        compiler_params=pltpu.CompilerParams(
            dimension_semantics=("parallel", "parallel")),
    )(mf_tiles, wm_cat)

    # Instance n reads image idx[n] (the python replication loop in torch).
    idx = jnp.asarray(np.repeat(np.arange(B, dtype=np.int32),
                                np.asarray(counts, dtype=np.int32)),
                      dtype=jnp.int32)

    # ---- kernel 2: per-instance att conv + gather(idx) + bias + ReLU -------
    out_flat = pl.pallas_call(
        functools.partial(_att_add_relu_kernel, W=W, Hb=Hb),
        out_shape=jax.ShapeDtypeStruct((N, Cout, H * W), jnp.float32),
        grid_spec=pltpu.PrefetchScalarGridSpec(
            num_scalar_prefetch=1,
            grid=(N, nH),
            in_specs=[
                pl.BlockSpec((None, Cout, HbW),
                             lambda n, t, idx_ref: (idx_ref[n], 0, t)),
                pl.BlockSpec((None, None, 1, LT),
                             lambda n, t, idx_ref: (n, t, 0, 0)),
                pl.BlockSpec((Cout, 9), lambda n, t, idx_ref: (0, 0)),
                pl.BlockSpec((Cout, 1), lambda n, t, idx_ref: (0, 0)),
            ],
            out_specs=pl.BlockSpec((None, Cout, HbW),
                                   lambda n, t, idx_ref: (n, 0, t)),
        ),
        compiler_params=pltpu.CompilerParams(
            dimension_semantics=("parallel", "parallel")),
    )(idx, mconv, at_tiles, wa_cat, b_cat)

    # Output is already dense: this reshape is free (no crop, no extra HBM pass).
    return out_flat.reshape(N, Cout, H, W)


def _reference(mask_feat, attention, ins_ind_count, params):
    """Pure-JAX reference matching the PyTorch forward."""
    w_m, b_m, w_a, b_a = params
    dn_m = jax.lax.conv_dimension_numbers(mask_feat.shape, w_m.shape,
                                          ("NCHW", "OIHW", "NCHW"))
    mo = jax.lax.conv_general_dilated(mask_feat, w_m, (1, 1), ((1, 1), (1, 1)),
                                      dimension_numbers=dn_m,
                                      precision=jax.lax.Precision.HIGHEST)
    mo = mo + b_m[None, :, None, None]
    dn_a = jax.lax.conv_dimension_numbers(attention.shape, w_a.shape,
                                          ("NCHW", "OIHW", "NCHW"))
    ao = jax.lax.conv_general_dilated(attention, w_a, (1, 1), ((1, 1), (1, 1)),
                                      dimension_numbers=dn_a,
                                      precision=jax.lax.Precision.HIGHEST)
    ao = ao + b_a[None, :, None, None]
    idx = np.repeat(np.arange(mask_feat.shape[0], dtype=np.int32),
                    np.asarray(ins_ind_count, dtype=np.int32))
    rep = mo[jnp.asarray(idx)]
    return jnp.maximum(rep + ao, 0.0)


if __name__ == "__main__":
    key = jax.random.PRNGKey(0)
    B, Cin, Cout, H, W = 2, 4, 8, 16, 16
    ins_ind_count = [3, 2]          # static per-image instance counts
    N = sum(ins_ind_count)

    k1, k2, k3, k4, k5, k6 = jax.random.split(key, 6)
    mask_feat = jax.random.normal(k1, (B, Cin, H, W), jnp.float32)
    attention = jax.random.normal(k2, (N, 1, H, W), jnp.float32)
    w_m = jax.random.normal(k3, (Cout, Cin, 3, 3), jnp.float32) * 0.1
    b_m = jax.random.normal(k4, (Cout,), jnp.float32) * 0.1
    w_a = jax.random.normal(k5, (Cout, 1, 3, 3), jnp.float32) * 0.1
    b_a = jax.random.normal(k6, (Cout,), jnp.float32) * 0.1
    params = (w_m, b_m, w_a, b_a)

    ref = jax.block_until_ready(
        _reference(mask_feat, attention, ins_ind_count, params))

    # Path 1: H-tiled (nH = 2) + single stacked-K matmul per tile (small Cin).
    out_a = jax.block_until_ready(
        mask_att_module(mask_feat, attention, ins_ind_count, params, hb=8))
    np.testing.assert_allclose(np.asarray(out_a), np.asarray(ref),
                               rtol=1e-3, atol=2e-3)

    # Path 2: single H tile + per-tap accumulate loop (the large-Cin path).
    out_b = jax.block_until_ready(
        mask_att_module(mask_feat, attention, ins_ind_count, params,
                        hb=16, stack_taps=False))
    np.testing.assert_allclose(np.asarray(out_b), np.asarray(ref),
                               rtol=1e-3, atol=2e-3)

    print("KERNEL_OK")
</pallas_src>

<mosaic_0001>
module attributes {stable_mosaic.version = 11 : i64} {
  func.func @_mask_conv_kernel(%arg0: i32, %arg1: i32, %arg2: memref<1x1x4x192xf32, #tpu.memory_space<vmem>>, %arg3: memref<8x36xf32, #tpu.memory_space<vmem>>, %arg4: memref<1x8x128xf32, #tpu.memory_space<vmem>>) attributes {dimension_semantics = [#tpu.dimension_semantics<parallel>, #tpu.dimension_semantics<parallel>], iteration_bounds = array<i64: 2, 2>, scalar_prefetch = 0 : i64, scratch_operands = 0 : i64, tpu.core_type = #tpu.core_type<tc>, window_params = [{transform_indices = @transform_0, window_bounds = array<i64: 1, 1, 4, 192>}, {pipeline_mode = #tpu.pipeline_mode<synchronous>, transform_indices = @transform_1, window_bounds = array<i64: 8, 36>}, {transform_indices = @transform_2, window_bounds = array<i64: 1, 8, 128>}]} {
    %0 = tpu.iota {dimensions = array<i32: 1>} : vector<1x128xi32>
    %c16_i32 = arith.constant 16 : i32
    %c0_i32 = arith.constant 0 : i32
    %1 = arith.cmpi eq, %c16_i32, %c0_i32 : i32
    %c1_i32 = arith.constant 1 : i32
    %2 = arith.select %1, %c1_i32, %c16_i32 : i32
    %3 = vector.broadcast %2 : i32 to vector<1x128xi32>
    %4 = arith.remsi %0, %3 : vector<1x128xi32>
    %c0_i32_0 = arith.constant 0 : i32
    %5 = vector.broadcast %c0_i32_0 : i32 to vector<1x128xi32>
    %6 = arith.cmpi ne, %4, %5 : vector<1x128xi32>
    %c0_i32_1 = arith.constant 0 : i32
    %7 = vector.broadcast %c0_i32_1 : i32 to vector<1x128xi32>
    %8 = arith.cmpi slt, %4, %7 : vector<1x128xi32>
    %c0_i32_2 = arith.constant 0 : i32
    %9 = arith.cmpi slt, %2, %c0_i32_2 : i32
    %10 = vector.broadcast %9 : i1 to vector<1x128xi1>
    %11 = vector.broadcast %10 : vector<1x128xi1> to vector<1x128xi1>
    %12 = arith.xori %8, %11 : vector<1x128xi1>
    %13 = arith.andi %12, %6 : vector<1x128xi1>
    %14 = vector.broadcast %2 : i32 to vector<1x128xi32>
    %15 = arith.addi %4, %14 : vector<1x128xi32>
    %16 = arith.select %13, %15, %4 : vector<1x128xi1>, vector<1x128xi32>
    %c0_i32_3 = arith.constant 0 : i32
    %17 = vector.broadcast %c0_i32_3 : i32 to vector<1x128xi32>
    %18 = arith.cmpi ne, %16, %17 : vector<1x128xi32>
    %19 = arith.extui %18 : vector<1x128xi1> to vector<1x128xi32>
    %20 = arith.sitofp %19 : vector<1x128xi32> to vector<1x128xf32>
    %c15_i32 = arith.constant 15 : i32
    %21 = vector.broadcast %c15_i32 : i32 to vector<1x128xi32>
    %22 = arith.cmpi ne, %16, %21 : vector<1x128xi32>
    %23 = arith.extui %22 : vector<1x128xi1> to vector<1x128xi32>
    %24 = arith.sitofp %23 : vector<1x128xi32> to vector<1x128xf32>
    %c0 = arith.constant 0 : index
    %c0_4 = arith.constant 0 : index
    %c0_5 = arith.constant 0 : index
    %c15 = arith.constant 15 : index
    %25 = vector.load %arg2[%c0, %c0_4, %c0_5, %c15] : memref<1x1x4x192xf32, #tpu.memory_space<vmem>>, vector<1x1x4x128xf32>
    %26 = vector.shape_cast %25 : vector<1x1x4x128xf32> to vector<4x128xf32>
    %27 = vector.broadcast %20 : vector<1x128xf32> to vector<4x128xf32>
    %28 = arith.mulf %26, %27 : vector<4x128xf32>
    %c0_6 = arith.constant 0 : index
    %c0_7 = arith.constant 0 : index
    %c0_8 = arith.constant 0 : index
    %c16 = arith.constant 16 : index
    %29 = vector.load %arg2[%c0_6, %c0_7, %c0_8, %c16] : memref<1x1x4x192xf32, #tpu.memory_space<vmem>>, vector<1x1x4x128xf32>
    %30 = vector.shape_cast %29 : vector<1x1x4x128xf32> to vector<4x128xf32>
    %c0_9 = arith.constant 0 : index
    %c0_10 = arith.constant 0 : index
    %c0_11 = arith.constant 0 : index
    %c17 = arith.constant 17 : index
    %31 = vector.load %arg2[%c0_9, %c0_10, %c0_11, %c17] : memref<1x1x4x192xf32, #tpu.memory_space<vmem>>, vector<1x1x4x128xf32>
    %32 = vector.shape_cast %31 : vector<1x1x4x128xf32> to vector<4x128xf32>
    %33 = vector.broadcast %24 : vector<1x128xf32> to vector<4x128xf32>
    %34 = arith.mulf %32, %33 : vector<4x128xf32>
    %c0_12 = arith.constant 0 : index
    %c0_13 = arith.constant 0 : index
    %c0_14 = arith.constant 0 : index
    %c31 = arith.constant 31 : index
    %35 = vector.load %arg2[%c0_12, %c0_13, %c0_14, %c31] : memref<1x1x4x192xf32, #tpu.memory_space<vmem>>, vector<1x1x4x128xf32>
    %36 = vector.shape_cast %35 : vector<1x1x4x128xf32> to vector<4x128xf32>
    %37 = vector.broadcast %20 : vector<1x128xf32> to vector<4x128xf32>
    %38 = arith.mulf %36, %37 : vector<4x128xf32>
    %c0_15 = arith.constant 0 : index
    %c0_16 = arith.constant 0 : index
    %c0_17 = arith.constant 0 : index
    %c32 = arith.constant 32 : index
    %39 = vector.load %arg2[%c0_15, %c0_16, %c0_17, %c32] : memref<1x1x4x192xf32, #tpu.memory_space<vmem>>, vector<1x1x4x128xf32>
    %40 = vector.shape_cast %39 : vector<1x1x4x128xf32> to vector<4x128xf32>
    %c0_18 = arith.constant 0 : index
    %c0_19 = arith.constant 0 : index
    %c0_20 = arith.constant 0 : index
    %c33 = arith.constant 33 : index
    %41 = vector.load %arg2[%c0_18, %c0_19, %c0_20, %c33] : memref<1x1x4x192xf32, #tpu.memory_space<vmem>>, vector<1x1x4x128xf32>
    %42 = vector.shape_cast %41 : vector<1x1x4x128xf32> to vector<4x128xf32>
    %43 = vector.broadcast %24 : vector<1x128xf32> to vector<4x128xf32>
    %44 = arith.mulf %42, %43 : vector<4x128xf32>
    %c0_21 = arith.constant 0 : index
    %c0_22 = arith.constant 0 : index
    %c0_23 = arith.constant 0 : index
    %c47 = arith.constant 47 : index
    %45 = vector.load %arg2[%c0_21, %c0_22, %c0_23, %c47] : memref<1x1x4x192xf32, #tpu.memory_space<vmem>>, vector<1x1x4x128xf32>
    %46 = vector.shape_cast %45 : vector<1x1x4x128xf32> to vector<4x128xf32>
    %47 = vector.broadcast %20 : vector<1x128xf32> to vector<4x128xf32>
    %48 = arith.mulf %46, %47 : vector<4x128xf32>
    %c0_24 = arith.constant 0 : index
    %c0_25 = arith.constant 0 : index
    %c0_26 = arith.constant 0 : index
    %c48 = arith.constant 48 : index
    %49 = vector.load %arg2[%c0_24, %c0_25, %c0_26, %c48] : memref<1x1x4x192xf32, #tpu.memory_space<vmem>>, vector<1x1x4x128xf32>
    %50 = vector.shape_cast %49 : vector<1x1x4x128xf32> to vector<4x128xf32>
    %c0_27 = arith.constant 0 : index
    %c0_28 = arith.constant 0 : index
    %c0_29 = arith.constant 0 : index
    %c49 = arith.constant 49 : index
    %51 = vector.load %arg2[%c0_27, %c0_28, %c0_29, %c49] : memref<1x1x4x192xf32, #tpu.memory_space<vmem>>, vector<1x1x4x128xf32>
    %52 = vector.shape_cast %51 : vector<1x1x4x128xf32> to vector<4x128xf32>
    %53 = vector.broadcast %24 : vector<1x128xf32> to vector<4x128xf32>
    %54 = arith.mulf %52, %53 : vector<4x128xf32>
    %55 = tpu.concatenate %28, %30, %34, %38, %40, %44, %48, %50, %54 in 0 : vector<4x128xf32>, vector<4x128xf32>, vector<4x128xf32>, vector<4x128xf32>, vector<4x128xf32>, vector<4x128xf32>, vector<4x128xf32>, vector<4x128xf32>, vector<4x128xf32> -> vector<36x128xf32>
    %c0_30 = arith.constant 0 : index
    %c0_31 = arith.constant 0 : index
    %56 = vector.load %arg3[%c0_30, %c0_31] : memref<8x36xf32, #tpu.memory_space<vmem>>, vector<8x36xf32>
    %cst = arith.constant dense<0.000000e+00> : vector<8x128xf32>
    %57 = tpu.matmul %56, %55, %cst {dimension_numbers = #tpu.dot_dimension_numbers<[1], [0], [0], [1], [0, 0, 1, 1], [], []>} : vector<8x36xf32>, vector<36x128xf32>, vector<8x128xf32> -> vector<8x128xf32>
    %c0_32 = arith.constant 0 : index
    %c0_33 = arith.constant 0 : index
    %c0_34 = arith.constant 0 : index
    %58 = vector.load %arg4[%c0_32, %c0_33, %c0_34] : memref<1x8x128xf32, #tpu.memory_space<vmem>>, vector<1x8x128xf32>
    %59 = vector.shape_cast %58 : vector<1x8x128xf32> to vector<8x128xf32>
    %60 = vector.shape_cast %57 : vector<8x128xf32> to vector<1x8x128xf32>
    tpu.vector_store %arg4[%c0_32, %c0_33, %c0_34], %60 {strides = array<i32>} : memref<1x8x128xf32, #tpu.memory_space<vmem>>, vector<1x8x128xf32>,
    return
  }
  func.func @transform_0(%arg0: i32, %arg1: i32) -> (i32, i32, i32, i32) {
    %c0_i32 = arith.constant 0 : i32
    %c0_i32_0 = arith.constant 0 : i32
    %c0_i32_1 = arith.constant 0 : i32
    return %arg0, %arg1, %c0_i32, %c0_i32_0 : i32, i32, i32, i32
  }
  func.func @transform_1(%arg0: i32, %arg1: i32) -> (i32, i32) {
    %c0_i32 = arith.constant 0 : i32
    %c0_i32_0 = arith.constant 0 : i32
    %c0_i32_1 = arith.constant 0 : i32
    return %c0_i32, %c0_i32_0 : i32, i32
  }
  func.func @transform_2(%arg0: i32, %arg1: i32) -> (i32, i32, i32) {
    %c0_i32 = arith.constant 0 : i32
    %c0_i32_0 = arith.constant 0 : i32
    return %arg0, %c0_i32, %arg1 : i32, i32, i32
  }
}

</mosaic_0001>

<bundles_post_ra>
// kernel: tpu_custom_call.1
= control target key start
LH: loop header
LB: loop body
LE: loop exit
PB: predicated region body
PF: predicated region fallthrough
CT: control target
= control target key end

     0   :  { %s1126_s0 = inlined_call_operand.hbm [shape: f32[2,2,4,192], index: 0, kind: input, shape index: {}]   ;;  %s1127_s1 = inlined_call_operand.hbm [shape: f32[8,36], index: 1, kind: input, shape index: {}]   ;;  %s1128_s2 = inlined_call_operand.hbm [shape: f32[2,8,256], index: 2, kind: output, shape index: {}]  }
   0x1   :  { %1133 = sst [smem:[#allocation15_spill]] %s1127_s1 }
   0x2   :  { %7 = vsyncpa [#allocation3], 0 }
   0x3   :  { %9 = vsyncpa [#allocation3 + $0x1], 0 }
   0x4   :  { %10 = vsyncpa [#allocation6], 0 }
   0x5   :  { %11 = vsyncpa [#allocation4], 0 }
   0x6   :  { %13 = vsyncpa [#allocation4 + $0x1], 0  ;;  %s929_s9 = smov 0   ;;  %s931_s10 = smov 0  }
   0x7   :  { %s933_s11 = smov 0   ;;  %s935_s12 = smov 0  }
   0x8   :  { %s937_s13 = smov 0   ;;  %s939_s14 = smov 0  }
   0x9   :  { %s941_s15 = smov 0   ;;  %s943_s16 = smov 0  }
   0xa LB: > { %1134 = sst [smem:[#allocation11_spill]] %s867_s9  ;;  %s551_s17 = sadd.s32 4294967295, %s895_s16   ;;  %s895_s16 = sphi %s943_s16, %s19_s16   ;;  %s891_s15 = sphi %s941_s15, %s1155_s15   ;;  %s887_s14 = sphi %s939_s14, %s1154_s14   ;;  %s883_s13 = sphi %s937_s13, %s1153_s13   ;;  %s879_s12 = sphi %s935_s12, %s1152_s12   ;;  %s875_s11 = sphi %s933_s11, %s1151_s11   ;;  %s871_s10 = sphi %s931_s10, %s1150_s10   ;;  %s867_s9 = sphi %s929_s9, %s1149_s9  }
   0xb   : > { %s552_s18 = sadd.s32 4294967294, %s895_s16   ;;  %p53_p0 = scmp.ne.s32.totalorder %s871_s10, %s867_s9 }
   0xc   : > { %p973_p1 = scmp.eq.s32.totalorder %s551_s17, 0  ;;  %p106_p2 = scmp.eq.s32.totalorder %s552_s18, 3 }
   0xd   : > { %p553_p4 = scmp.ge.s32.totalorder %s895_s16, 1  ;;  %p113_p6 = scmp.lt.s32.totalorder %s895_s16, 5 }
   0xe   : > { %p979_p3 = por %p973_p1, %p53_p0  ;;  %p984_p5 = por %p106_p2, %p53_p0 }
   0xf   : > { %s1139_s1 = sld [smem:[#allocation15_spill]]  ;;  %p992_p7 = pnand %p553_p4, %p113_p6 }
  0x10   : > { %s1137_s21 = scalar_select %p984_p5, 1, 0 }
  0x11   : > { %p581_p8 = pneg %p992_p7  ;;  %s897_s26 = smov [#allocation5]  }
  0x12   : > { %1138 = sst [smem:[#allocation12_spill]] %s1137_s21  ;;  %s127_s27 = sshll.u32 %s897_s26, 4  ;;  %s128_s27 = int_to_ptr.vmem [resolvable:$true] %s127_s27 }
  0x13   : > { %p582_p9 = pnand %p581_p8, %p973_p1  ;;  %s28_s28 = sadd.s32 1, %s887_s14 }
  0x14   : > { %p29_p10 = scmp.ge.s32.totalorder %s28_s28, 2  ;;  %s31_s29 = sadd.s32 1, %s891_s15 }
  0x15   : > { %s125_s24 = sshll.u32 %s1139_s1, 4  ;;  %p100_p11 = scmp.eq.s32.totalorder %s551_s17, 3  ;;  %s126_s24 = int_to_ptr.hbm [resolvable:$true] %s125_s24 }
  0x16   : > { %584 = dma.hbm_to_vmem [thread:$0]  (!%p582_p9), %s126_s24, 128, %s128_s27, [#allocation6]  }
  0x17   : > { %p47_p12 = scmp.ne.s32.totalorder %s875_s11, %s871_s10  ;;  %s1157_s28 = smov (%p29_p10, %s28_s28), 0 }
  0x18   : > { %1141 = sst [smem:[#allocation13_spill]] %s1157_s28  ;;  %s1159_s29 = smov (!%p29_p10, %s31_s29), %s891_s15 }
  0x19   : > { %s40_s30 = sadd.s32 1, %s875_s11  ;;  %p48_p13 = scmp.eq.s32.totalorder %s895_s16, 0 }
  0x1a   : > { %p33_p0 = scmp.ge.s32.totalorder %s1159_s29, 2  ;;  %p1009_p2 = por %p100_p11, %p47_p12 }
  0x1b   : > { %s36_s4 = ssub.s32 %s887_s14, %s1157_s28  ;;  %p1015_p4 = por %p48_p13, %p47_p12 }
  0x1c   : > { %s1161_s29 = smov (%p33_p0, %s1159_s29), 0  ;;  %p594_p6 = scmp.lt.s32.totalorder %s895_s16, 4 }
  0x1d   : > { %1144 = sst [smem:[#allocation14_spill]] %s1161_s29  ;;  %s138_s6 = sand.u32 1, %s875_s11  }
  0x1e   : > { %s35_s7 = ssub.s32 %s891_s15, %s1161_s29  ;;  %s557_s8 = sshll.u32 %s887_s14, 1 }
  0x1f   : > { %s37_s17 = sor.u32 %s36_s4, %s35_s7  ;;  %s556_s18 = sshll.u32 %s138_s6, 3 }
  0x20   : > { %p38_p8 = scmp.eq.s32.totalorder %s37_s17, 0  ;;  %s558_s22 = sshll.u32 %s891_s15, 2 }
  0x21   : > { %s142_s23 = scalar_lea.vmem [#allocation2], %s556_s18  ;;  %s147_s27 = sadd.s32 %s558_s22, %s557_s8 }
  0x22   : > { %s153_s24 = sshll.u32 %s142_s23, 4  ;;  %s559_s1 = sshll.u32 %s147_s27, 2  ;;  %s154_s24 = int_to_ptr.vmem [resolvable:$true] %s153_s24 }
  0x23   : > { %s1028_s26 = scalar_select %p38_p8, %s875_s11, %s40_s30  }
  0x24   : > { %p586_p9 = pnand %p594_p6, %p1015_p4  ;;  %s149_s9 = scalar_lea.hbm %s1126_s0, %s559_s1 }
  0x25   : > { %s151_s29 = sshll.u32 %s149_s9, 4  ;;  %s139_s4 = scalar_lea.sflag [#allocation3], %s138_s6  ;;  %s152_s29 = int_to_ptr.hbm [resolvable:$true] %s151_s29 }
  0x26   : > { %588 = dma.hbm_to_vmem [thread:$0]  (!%p586_p9), %s152_s29, 128, %s154_s24, %s139_s4  }
  0x27   : > { %162 = sbr.rel (%p992_p7) target bundleno = 626 (0x272), region = 28  ;;  %s1040_s30 = sand.u32 (!%p992_p7), 1, %s871_s10  }
  0x28   : > { %s561_s5 = sshll.u32 (!%p992_p7), %s1040_s30, 3  ;;  %s165_s7 = scalar_lea.sflag (!%p992_p7), [#allocation3], %s1040_s30 }
  0x29   : > { %s168_s21 = scalar_lea.vmem (!%p992_p7), [#allocation2], %s561_s5 }
  0x2c   : > { %854 = dma.done.wait (%p979_p3), %s165_s7, 128  }
  0x2d   : > { %856 = vsyncadd (%p979_p3), %s165_s7, 4294967168  ;;  %v195_v0 = vlaneseq }
  0x2e   : > { %858 = dma.done.wait (%p973_p1), [#allocation6], 128  }
  0x2f   : > { %860 = vsyncadd (%p973_p1), [#allocation6], 4294967168  ;;  %v196_v1 = vand.u32 127, %v195_v0  ;;  %v898_v3 = vmov 0.0   ;;  %s899_s1 = smov 15   ;;  %s900_s9 = smov 31  }
  0x30   : > { %s901_s25 = smov 47   ;;  %s902_s20 = smov 17   ;;  %vm220_vm2 = vcmask 121856   ;;  %v215_v7 = vld [vmem:[%s168_s21] sm:$0xff]  ;;  %vm228_vm3 = vcmask 138240   ;;  %vm235_vm4 = vcmask 252928  }
  0x31   : > { %v201_v2 = vand.u32 15, %v196_v1  ;;  %s903_s28 = smov 33   ;;  %s904_s29 = smov 49   ;;  %vm242_vm5 = vcmask 269312   ;;  %vm249_vm6 = vcmask 384000   ;;  %vm256_vm7 = vcmask 400384  }
  0x32   : > { %s905_s19 = smov 111   ;;  %s906_s6 = smov 110   ;;  %vm336_vm8 = vcmask 785408   ;;  %vm348_vm9 = vcmask 777216   ;;  %vm362_vm10 = vcmask 1043456   ;;  %vm275_vm11 = vcmask 1039360  }
  0x33   : > { %vm209_vm0 = vcmp.ne.s32.totalorder %v201_v2, 0  ;;  %vm212_vm1 = vcmp.ne.s32.totalorder %v201_v2, 15  ;;  %s907_s8 = smov 96   ;;  %s908_s17 = smov 127   ;;  %vm360_vm12 = vcmask 769024   ;;  %vm311_vm13 = vcmask 908288  }
  0x34   : > { %v564_v4 = vsel %vm209_vm0, 1.0, %v898_v3  ;;  %v565_v5 = vsel %vm212_vm1, 1.0, %v898_v3  ;;  %s909_s18 = smov 95   ;;  %s910_s22 = smov 94   ;;  %vm324_vm14 = vcmask 900096   ;;  %vm300_vm15 = vcmask 916480  }
  0x35   : > { %217 = vrot.lane.b32.xlu0 %v564_v4, %s899_s1  ;;  %232 = vrot.lane.b32.xlu1 %v564_v4, %s900_s9  ;;  %s911_s23 = smov 112   ;;  %s912_s24 = smov 126   ;;  %vm287_vm0 = vcmask 1031168   ;;  %vm400_vm1 = vcmask 924672  }
  0x36   : > { %246 = vrot.lane.b32.xlu2 %v564_v4, %s901_s25  ;;  %s913_s27 = smov 113   ;;  %s569_s4 = sshll.u32 %s883_s13, 1 }
  0x37   : > { %s448_s7 = sadd.s32 %s879_s12, %s569_s4 }
  0x38   : > { %s570_s21 = sshll.u32 %s448_s7, 3 }
  0x39   : > { %s450_s25 = scalar_lea.hbm %s1128_s2, %s570_s21 }
  0x3d   : > { %225 = vrot.lane.b32.xlu0 %v565_v5, %s902_s20  ;;  %239 = vrot.lane.b32.xlu1 %v565_v5, %s903_s28  ;;  %s194_s20 = scalar_lea.vmem [#allocation7], %s561_s5 }
  0x3e   : > { %253 = vrot.lane.b32.xlu2 %v565_v5, %s904_s29  ;;  %s452_s28 = sshll.u32 %s194_s20, 4  ;;  %s454_s29 = sshll.u32 %s450_s25, 4  ;;  %s453_s28 = int_to_ptr.vmem [resolvable:$true] %s452_s28  ;;  %s455_s29 = int_to_ptr.hbm [resolvable:$true] %s454_s29 }
  0x90   : > { %v247_v30 = vpop.permute.xlu2 %246 }
  0x91   : > { %v248_v32 = vrot.slane %v247_v30, 4 }
  0x93   : > { %v250_v36 = vsel %vm249_vm6, %v248_v32, %v247_v30 }
  0x94   : > { %v252_v37 = vmul.f32 %v250_v36, %v215_v7 }
  0x98   : > { %v254_v41 = vpop.permute.xlu2 %253 }
  0x99   : > { %v255_v42 = vrot.slane %v254_v41, 4 }
  0x9b   : > { %v257_v46 = vsel %vm256_vm7, %v255_v42, %v254_v41 }
  0x9c   : > { %v259_v47 = vmul.f32 %v257_v46, %v215_v7 }
  0xa7   : > { %v218_v6 = vpop.permute.xlu0 %217  ;;  %v233_v16 = vpop.permute.xlu1 %232 }
  0xa8   : > { %v219_v8 = vrot.slane %v218_v6, 4  ;;  %v234_v18 = vrot.slane %v233_v16, 4 }
  0xaa   : > { %v221_v9 = vsel %vm220_vm2, %v219_v8, %v218_v6  ;;  %v236_v21 = vsel %vm235_vm4, %v234_v18, %v233_v16  ;;  %vm410_vm2 = vcmask 293888  }
  0xab   : > { %v223_v10 = vmul.f32 %v221_v9, %v215_v7  ;;  %v238_v22 = vmul.f32 %v236_v21, %v215_v7 }
  0xad   : > { %261 = vst [vmem:[#allocation1] ss:$2 sm:$0xff] %v223_v10 }
  0xaf   : > { %v226_v11 = vpop.permute.xlu0 %225  ;;  %v240_v25 = vpop.permute.xlu1 %239 }
  0xb0   : > { %v227_v12 = vrot.slane %v226_v11, 4  ;;  %v241_v26 = vrot.slane %v240_v25, 4 }
  0xb2   : > { %v229_v15 = vsel %vm228_vm3, %v227_v12, %v226_v11  ;;  %v243_v29 = vsel %vm242_vm5, %v241_v26, %v240_v25 }
  0xb3   : > { %v231_v17 = vmul.f32 %v229_v15, %v215_v7  ;;  %v245_v31 = vmul.f32 %v243_v29, %v215_v7 }
  0xb4   : > { %v1054_v13 = vld.sshfl [vmem:[#allocation1] sm:$0xff pattern:$0x75316420]  ;;  %v1056_v14 = vld.sshfl [vmem:[#allocation1 + $0x8] sm:$0xff pattern:$0x75316420] }
  0xb5   : > { %268 = vst [vmem:[#allocation1 + $0x1] ss:$2 sm:$0xff] %v215_v7 }
  0xbc   : > { %v269_v19 = vld.sshfl [vmem:[#allocation1] sm:$0xff pattern:$0x75316420]  ;;  %v270_v20 = vld.sshfl [vmem:[#allocation1 + $0x8] sm:$0xff pattern:$0x75316420] }
  0xbd   : > { %280 = vst [vmem:[#allocation1] ss:$2 sm:$0xff] %v231_v17  ;;  %v708_v50 = vpack.i.bf16 %v270_v20, %v269_v19 }
  0xc4   : > { %v281_v23 = vld.sshfl [vmem:[#allocation1] sm:$0xff pattern:$0x75316420]  ;;  %v282_v24 = vld.sshfl [vmem:[#allocation1 + $0x8] sm:$0xff pattern:$0x75316420] }
  0xc5   : > { %293 = vst [vmem:[#allocation1 + $0x1] ss:$2 sm:$0xff] %v238_v22  ;;  %v698_v55 = vpack.i.bf16 %v282_v24, %v281_v23 }
  0xcc   : > { %v294_v27 = vld.sshfl [vmem:[#allocation1] sm:$0xff pattern:$0x75316420]  ;;  %v295_v28 = vld.sshfl [vmem:[#allocation1 + $0x8] sm:$0xff pattern:$0x75316420] }
  0xcd   : > { %304 = vst [vmem:[#allocation1] ss:$2 sm:$0xff] %v215_v7  ;;  %v703_v54 = vpack.i.bf16 %v295_v28, %v294_v27 }
  0xd4   : > { %v305_v33 = vld.sshfl [vmem:[#allocation1] sm:$0xff pattern:$0x75316420]  ;;  %v306_v34 = vld.sshfl [vmem:[#allocation1 + $0x8] sm:$0xff pattern:$0x75316420] }
  0xd5   : > { %v678_v35 = vpack.i.bf16 %v306_v34, %v305_v33  ;;  %317 = vst [vmem:[#allocation1 + $0x1] ss:$2 sm:$0xff] %v245_v31 }
  0xd7   : > { %679 = vrot.lane.b32.xlu1 %v678_v35, %s905_s19  ;;  %s438_s19 = scalar_lea.sflag [#allocation4], %s1040_s30 }
  0xdc   : > { %v318_v38 = vld.sshfl [vmem:[#allocation1] sm:$0xff pattern:$0x75316420]  ;;  %v319_v39 = vld.sshfl [vmem:[#allocation1 + $0x8] sm:$0xff pattern:$0x75316420] }
  0xdd   : > { %v683_v40 = vpack.i.bf16 %v319_v39, %v318_v38  ;;  %329 = vst [vmem:[#allocation1] ss:$2 sm:$0xff] %v252_v37 }
  0xdf   : > { %684 = vrot.lane.b32.xlu2 %v683_v40, %s906_s6  ;;  %s807_s6 = sshra.s32 %s455_s29, 4  ;;  %s808_s6 = int_to_ptr.hbm [resolvable:$true] %s807_s6 }
  0xe0   : > { %p814_p10 = scmp.lt.s32.totalorder %s808_s6, %s1128_s2 }
  0xe4   : > { %v330_v43 = vld.sshfl [vmem:[#allocation1] sm:$0xff pattern:$0x75316420]  ;;  %v331_v44 = vld.sshfl [vmem:[#allocation1 + $0x8] sm:$0xff pattern:$0x75316420] }
  0xe5   : > { %v688_v45 = vpack.i.bf16 %v331_v44, %v330_v43  ;;  %341 = vst [vmem:[#allocation1 + $0x1] ss:$2 sm:$0xff] %v215_v7 }
  0xe7   : > { %689 = vrot.lane.b32.xlu2 %v688_v45, %s907_s8  ;;  %s809_s8 = scalar_lea.hbm %s808_s6, 8 }
  0xe8   : > { %p810_p1 = scmp.ne.s32.totalorder %s808_s6, %s809_s8 }
  0xea   : > { %p811_p3 = pnand %p810_p1, %p1009_p2 }
  0xec   : > { %v342_v48 = vld.sshfl [vmem:[#allocation1] sm:$0xff pattern:$0x75316420]  ;;  %v343_v49 = vld.sshfl [vmem:[#allocation1 + $0x8] sm:$0xff pattern:$0x75316420]  ;;  %p812_p7 = pneg %p811_p3 }
  0xed   : > { %v693_v51 = vpack.i.bf16 %v343_v49, %v342_v48  ;;  %353 = vst [vmem:[#allocation1] ss:$2 sm:$0xff] %v259_v47 }
  0xef   : > { %709 = vrot.lane.b32.xlu2 %v708_v50, %s908_s17  ;;  %694 = vrot.lane.b32.xlu0 %v693_v51, %s909_s18  ;;  %s813_s17 = scalar_lea.hbm %s1128_s2, 32 }
  0xf0   : > { %p815_p11 = scmp.lt.s32.totalorder %s813_s17, %s809_s8 }
  0xf2   : > { %p816_p12 = por %p815_p11, %p814_p10 }
  0xf4   : > { %v355_v52 = vld.sshfl [vmem:[#allocation1 + $0x8] sm:$0xff pattern:$0x75316420]  ;;  %v354_v53 = vld.sshfl [vmem:[#allocation1] sm:$0xff pattern:$0x75316420]  ;;  %p817_p13 = pnand %p816_p12, %p812_p7 }
  0xf5   : > { %358 = vrot.lane.b32.xlu1 %v355_v52, %s910_s22 }
  0xf7   : > { %356 = vrot.lane.b32.xlu0 %v354_v53, %s910_s22  ;;  %v371_v53 = vld [vmem:[#allocation5] sm:$0xff] }
  0xfd   : > { %704 = vrot.lane.b32.xlu1 %v703_v54, %s911_s23 }
  0xff   : > { %699 = vrot.lane.b32.xlu0 %v698_v55, %s912_s24 }
 0x139   : > { %v685_v56 = vpop.permute.xlu2 %684 }
 0x13a   : > { %v687_v12 = vunpack.i.h.bf16 %v685_v56  ;;  %v686_v15 = vunpack.i.l.bf16 %v685_v56 }
 0x13c   : > { %v325_v21 = vsel %vm324_vm14, %v686_v15, %v687_v12 }
 0x141   : > { %v690_v57 = vpop.permute.xlu2 %689 }
 0x142   : > { %v692_v58 = vunpack.i.h.bf16 %v690_v57  ;;  %v691_v59 = vunpack.i.l.bf16 %v690_v57 }
 0x144   : > { %v337_v1 = vsel %vm336_vm8, %v691_v59, %v692_v58 }
 0x149   : > { %v680_v60 = vpop.permute.xlu1 %679  ;;  %v710_v61 = vpop.permute.xlu2 %709 }
 0x14a   : > { %v712_v2 = vunpack.i.h.bf16 %v710_v61  ;;  %v711_v3 = vunpack.i.l.bf16 %v710_v61  ;;  %v682_v8 = vunpack.i.h.bf16 %v680_v60  ;;  %v681_v9 = vunpack.i.l.bf16 %v680_v60 }
 0x14c   : > { %v276_v11 = vsel %vm275_vm11, %v711_v3, %v712_v2  ;;  %v312_v18 = vsel %vm311_vm13, %v681_v9, %v682_v8  ;;  %v364_v20 = vsel %vm362_vm10, %v1056_v14, %v712_v2  ;;  %v368_v24 = vsel %vm362_vm10, %v682_v8, %v687_v12 }
 0x14d   : > { %v363_v19 = vsel %vm362_vm10, %v1054_v13, %v276_v11  ;;  %v367_v23 = vsel %vm362_vm10, %v312_v18, %v325_v21 }
 0x14e   : > { %v728_v22 = vpack.i.bf16 %v364_v20, %v363_v19  ;;  %v718_v29 = vpack.i.bf16 %v368_v24, %v367_v23 }
 0x161   : > { %v695_v62 = vpop.permute.xlu0 %694 }
 0x162   : > { %v697_v63 = vunpack.i.h.bf16 %v695_v62  ;;  %v696_v0 = vunpack.i.l.bf16 %v695_v62 }
 0x164   : > { %v349_v4 = vsel %vm348_vm9, %v696_v0, %v697_v63  ;;  %v370_v5 = vsel %vm362_vm10, %v692_v58, %v697_v63 }
 0x165   : > { %v369_v6 = vsel %vm362_vm10, %v337_v1, %v349_v4 }
 0x166   : > { %v713_v7 = vpack.i.bf16 %v370_v5, %v369_v6 }
 0x167   : > { %v359_v10 = vpop.permute.xlu1 %358 }
 0x168   : > { %714 = vrot.lane.b32.xlu2 %v713_v7, %s913_s27  ;;  %398 = vrot.lane.b32.xlu1 %v359_v10, %s913_s27 }
 0x169   : > { %v357_v16 = vpop.permute.xlu0 %356 }
 0x16a   : > { %v361_v17 = vsel %vm360_vm12, %v357_v16, %v359_v10 }
 0x16b   : > { %396 = vrot.lane.b32.xlu0 %v361_v17, %s913_s27 }
 0x16f   : > { %v705_v25 = vpop.permute.xlu1 %704 }
 0x170   : > { %v707_v26 = vunpack.i.h.bf16 %v705_v25  ;;  %v706_v27 = vunpack.i.l.bf16 %v705_v25  ;;  %729 = vrot.lane.b32.xlu2 %v728_v22, %s913_s27 }
 0x171   : > { %v700_v28 = vpop.permute.xlu0 %699 }
 0x172   : > { %v702_v30 = vunpack.i.h.bf16 %v700_v28  ;;  %v701_v13 = vunpack.i.l.bf16 %v700_v28  ;;  %v301_v14 = vsel %vm300_vm15, %v706_v27, %v707_v26 }
 0x173   : > { %719 = vrot.lane.b32.xlu0 %v718_v29, %s913_s27 }
 0x174   : > { %v288_v31 = vsel %vm287_vm0, %v701_v13, %v702_v30  ;;  %v366_v32 = vsel %vm362_vm10, %v702_v30, %v707_v26 }
 0x175   : > { %v365_v33 = vsel %vm362_vm10, %v288_v31, %v301_v14 }
 0x176   : > { %v723_v34 = vpack.i.bf16 %v366_v32, %v365_v33 }
 0x178   : > { %724 = vrot.lane.b32.xlu1 %v723_v34, %s913_s27 }
 0x1c2   : > { %v715_v35 = vpop.permute.xlu2 %714 }
 0x1c3   : > { %v717_v36 = vunpack.i.h.bf16 %v715_v35  ;;  %v716_v37 = vunpack.i.l.bf16 %v715_v35 }
 0x1c5   : > { %v404_v41 = vsel %vm400_vm1, %v716_v37, %v717_v36 }
 0x1ca   : > { %v730_v45 = vpop.permute.xlu2 %729 }
 0x1cb   : > { %v732_v48 = vunpack.i.h.bf16 %v730_v45  ;;  %v731_v49 = vunpack.i.l.bf16 %v730_v45 }
 0x1cd   : > { %v401_v54 = vsel %vm400_vm1, %v731_v49, %v732_v48 }
 0x1da   : > { %v399_v38 = vpop.permute.xlu1 %398 }
 0x1dd   : > { %v397_v39 = vpop.permute.xlu0 %396 }
 0x1de   : > { %v405_v40 = vsel %vm400_vm1, %v397_v39, %v399_v38 }
 0x1df   : > { %566 = vmatpush.msk.msra.mxu0 %vm362_vm10, %v405_v40 }
 0x1e1   : > { %428 = vmatpush.msra.mxu0 %v404_v41 }
 0x1e5   : > { %v720_v42 = vpop.permute.xlu0 %719 }
 0x1e6   : > { %v722_v43 = vunpack.i.h.bf16 %v720_v42  ;;  %v721_v44 = vunpack.i.l.bf16 %v720_v42 }
 0x1e8   : > { %v403_v46 = vsel %vm400_vm1, %v721_v44, %v722_v43 }
 0x1e9   : > { %429 = vmatpush.msra.mxu0 %v403_v46 }
 0x1ea   : > { %v725_v47 = vpop.permute.xlu1 %724 }
 0x1eb   : > { %v727_v50 = vunpack.i.h.bf16 %v725_v47  ;;  %v726_v51 = vunpack.i.l.bf16 %v725_v47 }
 0x1ed   : > { %v402_v52 = vsel %vm400_vm1, %v726_v51, %v727_v50 }
 0x1ee   : > { %430 = vmatpush.msra.mxu0 %v402_v52 }
 0x1f0   : > { %431 = vmatpush.msra.mxu0 %v401_v54 }
 0x1f1   : > { %567 = vmatmul.msk.f32.vlgmr.msra.gmra.mxu0 %vm410_vm2, %v371_v53 }
 0x26e   : > { %v433_v55 = vpop.f32.mrf.mxu0 }
 0x26f   : > { %436 = vst [vmem:[%s194_s20] sm:$0xff] %v433_v55 }
 0x270   : > { %820 = shalt.err (!%p817_p13)
}
 0x271   : > { %579 = dma.vmem_to_hbm [thread:$0]  (%p1009_p2), %s453_s28, 128, %s455_s29, %s438_s19  }
 0x272 PF: > { %s1145_s30 = sld [smem:[#allocation11_spill]]  ;;  %p596_p0 = scmp.ge.s32.totalorder %s895_s16, 2 }
 0x274   : > { %p590_p4 = pnand %p596_p0, %p984_p5 }
 0x276   : > { %p591_p6 = pneg %p590_p4 }
 0x278   : > { %s466_s23 = sand.u32 1, %s1145_s30  }
 0x279   : > { %s467_s24 = scalar_lea.sflag [#allocation4], %s466_s23 }
 0x27a   : > { %862 = dma.done.wait (%p591_p6), %s467_s24, 128  }
 0x27b   : > { %864 = vsyncadd (%p591_p6), %s467_s24, 4294967168  ;;  %s19_s16 = sadd.s32 1, %s895_s16   ;;  %s1147_s3 = sld [smem:[#allocation13_spill]] }
 0x27c   : > { %p16_p8 = scmp.ge.s32.totalorder %s19_s16, 6   ;;  %s1148_s27 = sld [smem:[#allocation14_spill]] }
 0x27d   : > { %s1149_s9 = smov %s871_s10  ;;  %s1150_s10 = smov %s875_s11 }
 0x27e   : > { %s1151_s11 = smov %s1028_s26  ;;  %s1152_s12 = smov %s887_s14 }
 0x27f   : > { %s1153_s13 = smov %s891_s15  ;;  %18 = sbr.rel (!%p16_p8) target bundleno = 10 (0xa), region = 81 }
 0x281   : > { %s1154_s14 = smov %s1147_s3 }
 0x282   : > { %s1155_s15 = smov %s1148_s27 }
 0x284   :  { %473 = vsyncpa [#allocation3], 1 }
 0x285   :  { %475 = vsyncpa [#allocation3 + $0x1], 1 }
 0x286   :  { %476 = vsyncpa [#allocation6], 1 }
 0x287   :  { %477 = vsyncpa [#allocation4], 1 }
 0x288   :  { %479 = vsyncpa [#allocation4 + $0x1], 1 }

</bundles_post_ra>
